<compile_context>
chip_gen: v7x
topology: tpu7x:2x2x1
jax: 0.10.0
libtpu: 0.0.40
codegen_flags: <defaults>
</compile_context>

<pallas_src>
import functools

import jax
import jax.numpy as jnp
import numpy as np
from jax import lax
from jax.experimental import pallas as pl
from jax.experimental.pallas import tpu as pltpu


# ---------------------------------------------------------------------------
# Kernel 1: GroupNorm statistics -> per-channel scale / shift (affine folded in)
# ---------------------------------------------------------------------------
def gn_stats_kernel(x_ref, gamma_ref, beta_ref, gmat_ref,
                    scale_ref, shift_ref, sum_ref, sq_ref,
                    *, eps, n_total, group_size):
    ni = pl.program_id(1)

    @pl.when(ni == 0)
    def _():
        sum_ref[...] = jnp.zeros(sum_ref.shape, jnp.float32)
        sq_ref[...] = jnp.zeros(sq_ref.shape, jnp.float32)

    x = x_ref[0].astype(jnp.float32)                               # (C, TN)
    ones = jnp.ones((1, x.shape[1]), jnp.float32)
    dn = (((1,), (1,)), ((), ()))                                  # contract spatial axis (MXU)
    sum_ref[...] += lax.dot_general(ones, x, dn,
                                    preferred_element_type=jnp.float32)        # (1, C)
    sq_ref[...] += lax.dot_general(ones, x * x, dn,
                                   preferred_element_type=jnp.float32)         # (1, C)

    @pl.when(ni == pl.num_programs(1) - 1)
    def _():
        cnt = float(n_total * group_size)
        gmat = gmat_ref[...]                                       # (C, G) one-hot membership
        sum_g = jnp.dot(sum_ref[...], gmat, preferred_element_type=jnp.float32)   # (1, G)
        sq_g = jnp.dot(sq_ref[...], gmat, preferred_element_type=jnp.float32)     # (1, G)
        mean_g = sum_g / cnt
        # single-pass variance; clamp against catastrophic cancellation before rsqrt.
        var_g = jnp.maximum(sq_g / cnt - mean_g * mean_g, 0.0)
        inv_g = lax.rsqrt(var_g + eps)
        dng = (((1,), (1,)), ((), ()))                             # scatter back group -> channel
        mean_c = lax.dot_general(mean_g, gmat, dng, preferred_element_type=jnp.float32)  # (1, C)
        inv_c = lax.dot_general(inv_g, gmat, dng, preferred_element_type=jnp.float32)    # (1, C)
        scale_c = gamma_ref[...] * inv_c
        shift_c = beta_ref[...] - mean_c * scale_c
        scale_ref[0] = scale_c
        shift_ref[0] = shift_c


# ---------------------------------------------------------------------------
# Kernel 2: apply GroupNorm + fused qkv projection (bf16 MXU, f32 accumulate)
# ---------------------------------------------------------------------------
def qkv_kernel(x_ref, scale_ref, shift_ref, wqkv_ref, bqkv_ref,
               q_ref, k_ref, v_ref, *, c):
    ht = jnp.transpose(x_ref[0]).astype(jnp.float32)               # (TP, C)
    h = ht * scale_ref[0] + shift_ref[0]                           # GroupNorm (f32)
    hb = h.astype(jnp.bfloat16)
    qkv = jnp.dot(hb, wqkv_ref[...],                               # one wide (C, 3C) matmul
                  preferred_element_type=jnp.float32) + bqkv_ref[...]
    qkv = qkv.astype(jnp.bfloat16)
    q_ref[0] = qkv[:, :c]
    k_ref[0] = qkv[:, c:2 * c]
    v_ref[0] = qkv[:, 2 * c:]


# ---------------------------------------------------------------------------
# Kernel 3: flash attention (online softmax) + proj_out + residual
#   resident=True : k_ref / v_ref hold the full (N, C) K/V for this batch in VMEM;
#                   the current key tile is sliced in-kernel (no HBM re-streaming per qi).
#   resident=False: k_ref / v_ref are per-(ki) streamed (tk, C) tiles.
# ---------------------------------------------------------------------------
def flash_attn_kernel(q_ref, k_ref, v_ref, x_ref, wp_ref, bp_ref, o_ref,
                      m_ref, l_ref, acc_ref, *, tk, resident):
    ki = pl.program_id(2)

    @pl.when(ki == 0)
    def _():
        m_ref[...] = jnp.full(m_ref.shape, -jnp.inf, jnp.float32)
        l_ref[...] = jnp.zeros(l_ref.shape, jnp.float32)
        acc_ref[...] = jnp.zeros(acc_ref.shape, jnp.float32)

    if resident:
        start = pl.multiple_of(ki * tk, tk)
        k_tile = k_ref[0, pl.ds(start, tk), :]                     # (TK, C) bf16
        v_tile = v_ref[0, pl.ds(start, tk), :]
    else:
        k_tile = k_ref[0]
        v_tile = v_ref[0]

    dn = (((1,), (1,)), ((), ()))                                  # contract channel axis of q, k
    # sm_scale is pre-folded into the q weights/bias (wrapper), so no per-step multiply here.
    s = lax.dot_general(q_ref[0], k_tile, dn,
                        preferred_element_type=jnp.float32)        # (TQ, TK) f32

    m_prev = m_ref[...]
    m_new = jnp.maximum(m_prev, jnp.max(s, axis=-1, keepdims=True))
    alpha = jnp.exp(m_prev - m_new)
    p = jnp.exp(s - m_new)
    l_ref[...] = alpha * l_ref[...] + jnp.sum(p, axis=-1, keepdims=True)
    acc_ref[...] = alpha * acc_ref[...] + jnp.dot(
        p.astype(jnp.bfloat16), v_tile, preferred_element_type=jnp.float32)
    m_ref[...] = m_new

    @pl.when(ki == pl.num_programs(2) - 1)
    def _():
        out = acc_ref[...] * pl.reciprocal(l_ref[...], approx=True)           # (TQ, C) f32
        h = jnp.dot(out.astype(jnp.bfloat16), wp_ref[...],
                    preferred_element_type=jnp.float32) + bp_ref[...]         # (TQ, C) f32
        res = x_ref[0].astype(jnp.float32) + jnp.transpose(h)                 # (C, TQ) residual
        o_ref[0] = res.astype(o_ref.dtype)


# ---------------------------------------------------------------------------
# Wrapper
# ---------------------------------------------------------------------------
def _pick_tile(n, target):
    """Largest multiple-of-128 divisor of n that is <= target, else the full axis."""
    for t in (1024, 512, 384, 256, 128):
        if t <= target and n % t == 0:
            return t
    return n


def _vmem_budget_bytes():
    """Physical VMEM of the current chip minus headroom for Mosaic internal scratch."""
    cap = 64 * 1024 * 1024                       # conservative default (v7x per-TC)
    try:
        info = pltpu.get_tpu_info()
        c = getattr(info, "vmem_capacity_bytes", None)
        if c:
            cap = int(c)
    except Exception:
        pass
    return max(32 * 1024 * 1024, cap - 16 * 1024 * 1024)


def attn_block(x_nchw, params, num_groups=32, eps=1e-6,
               tq_target=512, tk_target=512, tp_target=512, tn_target=1024,
               kv_resident=None):
    B, C, H, W = x_nchw.shape
    assert C % num_groups == 0
    N = H * W
    group_size = C // num_groups

    # free view: NCHW -> (B, C, N); keep the native dtype (no blanket f32 upcast).
    x = x_nchw.reshape(B, C, N)
    x_itemsize = jnp.dtype(x.dtype).itemsize

    tq = _pick_tile(N, tq_target)
    tk = _pick_tile(N, tk_target)
    tp = _pick_tile(N, tp_target)
    tn = _pick_tile(N, tn_target)

    vmem_limit = _vmem_budget_bytes()

    # ---- decide whether K/V stay VMEM-resident across all query tiles of a batch ----
    kv_resident_bytes = 2 * (2 * N * C * 2)                    # K+V bf16, double-buffered
    other_bytes = (2 * tq * C * 2                              # q tile (bf16, double-buffered)
                   + 2 * C * tq * x_itemsize                   # residual x tile
                   + 2 * C * tq * x_itemsize                   # output tile
                   + 2 * (C * C * 2 + 4 * C)                   # proj weights / bias
                   + tq * C * 4 + 2 * tq * 4                   # acc / m / l scratch
                   + tq * tk * 4                               # score tile intermediate
                   + (4 << 20))                                # compiler scratch margin
    if kv_resident is None:
        kv_resident = (kv_resident_bytes + other_bytes) <= vmem_limit
    resident = bool(kv_resident)

    # group membership matrix (C, G)
    gmat = (jnp.arange(C)[:, None] // group_size ==
            jnp.arange(num_groups)[None, :]).astype(jnp.float32)
    gamma = params["gn_weight"].reshape(1, C).astype(jnp.float32)
    beta = params["gn_bias"].reshape(1, C).astype(jnp.float32)

    # conv weights (Cout, Cin, 1, 1) -> matmul weights (Cin, Cout); fuse q|k|v; bf16 for MXU.
    def wmat(w):
        return jnp.transpose(w.reshape(C, C), (1, 0))

    sm_scale = float(C) ** (-0.5)
    # fold sm_scale into the q projection (weights + bias) -> no per-step multiply in kernel 3.
    w_qkv = jnp.concatenate(
        [wmat(params["q_w"]) * sm_scale, wmat(params["k_w"]), wmat(params["v_w"])],
        axis=1).astype(jnp.bfloat16)                                          # (C, 3C)
    b_qkv = jnp.concatenate(
        [params["q_b"] * sm_scale, params["k_b"], params["v_b"]]
    ).reshape(1, 3 * C).astype(jnp.float32)
    w_p = wmat(params["proj_w"]).astype(jnp.bfloat16)                         # (C, C)
    b_p = params["proj_b"].reshape(1, C).astype(jnp.float32)

    # ---- kernel 1: GroupNorm stats -> scale / shift ----
    scale, shift = pl.pallas_call(
        functools.partial(gn_stats_kernel, eps=eps, n_total=N, group_size=group_size),
        grid=(B, N // tn),
        in_specs=[
            pl.BlockSpec((1, C, tn), lambda b, n: (b, 0, n)),
            pl.BlockSpec((1, C), lambda b, n: (0, 0)),
            pl.BlockSpec((1, C), lambda b, n: (0, 0)),
            pl.BlockSpec((C, num_groups), lambda b, n: (0, 0)),
        ],
        out_specs=[
            pl.BlockSpec((1, 1, C), lambda b, n: (b, 0, 0)),
            pl.BlockSpec((1, 1, C), lambda b, n: (b, 0, 0)),
        ],
        out_shape=[
            jax.ShapeDtypeStruct((B, 1, C), jnp.float32),
            jax.ShapeDtypeStruct((B, 1, C), jnp.float32),
        ],
        scratch_shapes=[pltpu.VMEM((1, C), jnp.float32),
                        pltpu.VMEM((1, C), jnp.float32)],
        compiler_params=pltpu.CompilerParams(
            dimension_semantics=("parallel", "arbitrary"),
            vmem_limit_bytes=vmem_limit),
    )(x, gamma, beta, gmat)

    # ---- kernel 2: normalize + fused qkv projection (bf16 outputs) ----
    q, k, v = pl.pallas_call(
        functools.partial(qkv_kernel, c=C),
        grid=(B, N // tp),
        in_specs=[
            pl.BlockSpec((1, C, tp), lambda b, p: (b, 0, p)),
            pl.BlockSpec((1, 1, C), lambda b, p: (b, 0, 0)),
            pl.BlockSpec((1, 1, C), lambda b, p: (b, 0, 0)),
            pl.BlockSpec((C, 3 * C), lambda b, p: (0, 0)),
            pl.BlockSpec((1, 3 * C), lambda b, p: (0, 0)),
        ],
        out_specs=[
            pl.BlockSpec((1, tp, C), lambda b, p: (b, p, 0)),
            pl.BlockSpec((1, tp, C), lambda b, p: (b, p, 0)),
            pl.BlockSpec((1, tp, C), lambda b, p: (b, p, 0)),
        ],
        out_shape=[
            jax.ShapeDtypeStruct((B, N, C), jnp.bfloat16),
            jax.ShapeDtypeStruct((B, N, C), jnp.bfloat16),
            jax.ShapeDtypeStruct((B, N, C), jnp.bfloat16),
        ],
        compiler_params=pltpu.CompilerParams(
            dimension_semantics=("parallel", "parallel"),
            vmem_limit_bytes=vmem_limit),
    )(x, scale, shift, w_qkv, b_qkv)

    # ---- kernel 3: flash attention + proj_out + residual ----
    if resident:
        # whole-batch K/V live in VMEM; index map ignores qi/ki so no re-DMA per query tile.
        k_spec = pl.BlockSpec((1, N, C), lambda b, qi, ki: (b, 0, 0))
        v_spec = pl.BlockSpec((1, N, C), lambda b, qi, ki: (b, 0, 0))
    else:
        # streaming fallback for very large N*C.
        k_spec = pl.BlockSpec((1, tk, C), lambda b, qi, ki: (b, ki, 0))
        v_spec = pl.BlockSpec((1, tk, C), lambda b, qi, ki: (b, ki, 0))

    out = pl.pallas_call(
        functools.partial(flash_attn_kernel, tk=tk, resident=resident),
        grid=(B, N // tq, N // tk),
        in_specs=[
            pl.BlockSpec((1, tq, C), lambda b, qi, ki: (b, qi, 0)),
            k_spec,
            v_spec,
            pl.BlockSpec((1, C, tq), lambda b, qi, ki: (b, 0, qi)),
            pl.BlockSpec((C, C), lambda b, qi, ki: (0, 0)),
            pl.BlockSpec((1, C), lambda b, qi, ki: (0, 0)),
        ],
        out_specs=pl.BlockSpec((1, C, tq), lambda b, qi, ki: (b, 0, qi)),
        out_shape=jax.ShapeDtypeStruct((B, C, N), x.dtype),
        scratch_shapes=[
            pltpu.VMEM((tq, 1), jnp.float32),   # running max
            pltpu.VMEM((tq, 1), jnp.float32),   # running denominator
            pltpu.VMEM((tq, C), jnp.float32),   # output accumulator
        ],
        compiler_params=pltpu.CompilerParams(
            dimension_semantics=("parallel", "parallel", "arbitrary"),
            vmem_limit_bytes=vmem_limit),
    )(q, k, v, x, w_p, b_p)

    # free view back to NCHW (dtype already matches the input)
    return out.reshape(B, C, H, W)


# ---------------------------------------------------------------------------
# Pure-JAX reference mirroring the PyTorch forward exactly (f32 everywhere).
# ---------------------------------------------------------------------------
def attn_block_reference(x_nchw, params, num_groups=32, eps=1e-6):
    B, C, H, W = x_nchw.shape
    x = x_nchw.astype(jnp.float32)
    xg = x.reshape(B, num_groups, C // num_groups, H, W)
    mean = xg.mean(axis=(2, 3, 4), keepdims=True)
    var = xg.var(axis=(2, 3, 4), keepdims=True)
    hn = ((xg - mean) / jnp.sqrt(var + eps)).reshape(B, C, H, W)
    hn = hn * params["gn_weight"].reshape(1, C, 1, 1) + params["gn_bias"].reshape(1, C, 1, 1)

    def conv1x1(h, w, b):
        return jnp.einsum("bchw,oc->bohw", h, w.reshape(C, C)) + b.reshape(1, C, 1, 1)

    q = conv1x1(hn, params["q_w"], params["q_b"])
    k = conv1x1(hn, params["k_w"], params["k_b"])
    v = conv1x1(hn, params["v_w"], params["v_b"])
    q = jnp.transpose(q.reshape(B, C, -1), (0, 2, 1))        # (B, N, C)
    k = k.reshape(B, C, -1)                                  # (B, C, N)
    a = jnp.einsum("bnc,bcm->bnm", q, k) * (float(C) ** (-0.5))
    a = jax.nn.softmax(a, axis=2)
    v = v.reshape(B, C, -1)
    h = jnp.einsum("bcm,bnm->bcn", v, a).reshape(B, C, H, W)
    h = conv1x1(h, params["proj_w"], params["proj_b"])
    return x + h


# ---------------------------------------------------------------------------
# Self-test
# ---------------------------------------------------------------------------
def _make_params(key, C):
    keys = jax.random.split(key, 10)
    return {
        "gn_weight": 1.0 + 0.1 * jax.random.normal(keys[0], (C,), jnp.float32),
        "gn_bias": 0.1 * jax.random.normal(keys[1], (C,), jnp.float32),
        "q_w": 0.1 * jax.random.normal(keys[2], (C, C, 1, 1), jnp.float32),
        "q_b": 0.1 * jax.random.normal(keys[3], (C,), jnp.float32),
        "k_w": 0.1 * jax.random.normal(keys[4], (C, C, 1, 1), jnp.float32),
        "k_b": 0.1 * jax.random.normal(keys[5], (C,), jnp.float32),
        "v_w": 0.1 * jax.random.normal(keys[6], (C, C, 1, 1), jnp.float32),
        "v_b": 0.1 * jax.random.normal(keys[7], (C,), jnp.float32),
        "proj_w": 0.1 * jax.random.normal(keys[8], (C, C, 1, 1), jnp.float32),
        "proj_b": 0.1 * jax.random.normal(keys[9], (C,), jnp.float32),
    }


if __name__ == "__main__":
    key = jax.random.PRNGKey(0)
    kp, kx1, kx2 = jax.random.split(key, 3)

    # small shape (single tile everywhere): B=2, C=64, H=W=8
    B, C, H, W = 2, 64, 8, 8            # C must be divisible by num_groups=32
    params = _make_params(kp, C)
    x_small = jax.random.normal(kx1, (B, C, H, W), jnp.float32)
    out = jax.block_until_ready(attn_block(x_small, params))
    ref = jax.block_until_ready(attn_block_reference(x_small, params))
    # bf16 MXU inputs -> loosened tolerance.
    np.testing.assert_allclose(np.asarray(out), np.asarray(ref), rtol=5e-2, atol=5e-2)

    # larger spatial extent: N = 1024 -> 2 query tiles x 2 key tiles (online-softmax path)
    B2, H2, W2 = 1, 32, 32
    x_big = jax.random.normal(kx2, (B2, C, H2, W2), jnp.float32)
    ref2 = jax.block_until_ready(attn_block_reference(x_big, params))

    # resident-K/V path (default for these sizes)
    out2 = jax.block_until_ready(attn_block(x_big, params, kv_resident=True))
    np.testing.assert_allclose(np.asarray(out2), np.asarray(ref2), rtol=5e-2, atol=5e-2)

    # streaming fallback path (forced), to keep the large-N code path tested
    out3 = jax.block_until_ready(attn_block(x_big, params, kv_resident=False))
    np.testing.assert_allclose(np.asarray(out3), np.asarray(ref2), rtol=5e-2, atol=5e-2)

    print("KERNEL_OK")
</pallas_src>

<mosaic_0001>
module attributes {stable_mosaic.version = 11 : i64} {
  func.func @gn_stats_kernel(%arg0: i32, %arg1: i32, %arg2: memref<1x64x64xf32, #tpu.memory_space<vmem>>, %arg3: memref<1x64xf32, #tpu.memory_space<vmem>>, %arg4: memref<1x64xf32, #tpu.memory_space<vmem>>, %arg5: memref<64x32xf32, #tpu.memory_space<vmem>>, %arg6: memref<1x1x64xf32, #tpu.memory_space<vmem>>, %arg7: memref<1x1x64xf32, #tpu.memory_space<vmem>>, %arg8: memref<1x64xf32, #tpu.memory_space<vmem>>, %arg9: memref<1x64xf32, #tpu.memory_space<vmem>>) attributes {dimension_semantics = [#tpu.dimension_semantics<parallel>, #tpu.dimension_semantics<arbitrary>], iteration_bounds = array<i64: 2, 1>, scalar_prefetch = 0 : i64, scratch_operands = 2 : i64, tpu.core_type = #tpu.core_type<tc>, window_params = [{transform_indices = @transform_0, window_bounds = array<i64: 1, 64, 64>}, {pipeline_mode = #tpu.pipeline_mode<synchronous>, transform_indices = @transform_1, window_bounds = array<i64: 1, 64>}, {pipeline_mode = #tpu.pipeline_mode<synchronous>, transform_indices = @transform_2, window_bounds = array<i64: 1, 64>}, {pipeline_mode = #tpu.pipeline_mode<synchronous>, transform_indices = @transform_3, window_bounds = array<i64: 64, 32>}, {transform_indices = @transform_4, window_bounds = array<i64: 1, 1, 64>}, {transform_indices = @transform_5, window_bounds = array<i64: 1, 1, 64>}]} {
    %c0_i32 = arith.constant 0 : i32
    %0 = arith.cmpi eq, %arg1, %c0_i32 : i32
    %1 = arith.extui %0 : i1 to i32
    %c0_i32_0 = arith.constant 0 : i32
    %2 = arith.cmpi ne, %1, %c0_i32_0 : i32
    scf.if %2 {
      %cst_15 = arith.constant 0.000000e+00 : f32
      %18 = vector.broadcast %cst_15 : f32 to vector<1x64xf32>
      %c0_16 = arith.constant 0 : index
      %c0_17 = arith.constant 0 : index
      %19 = vector.load %arg8[%c0_16, %c0_17] : memref<1x64xf32, #tpu.memory_space<vmem>>, vector<1x64xf32>
      tpu.vector_store %arg8[%c0_16, %c0_17], %18 {strides = array<i32>} : memref<1x64xf32, #tpu.memory_space<vmem>>, vector<1x64xf32>,
      %cst_18 = arith.constant 0.000000e+00 : f32
      %20 = vector.broadcast %cst_18 : f32 to vector<1x64xf32>
      %c0_19 = arith.constant 0 : index
      %c0_20 = arith.constant 0 : index
      %21 = vector.load %arg9[%c0_19, %c0_20] : memref<1x64xf32, #tpu.memory_space<vmem>>, vector<1x64xf32>
      tpu.vector_store %arg9[%c0_19, %c0_20], %20 {strides = array<i32>} : memref<1x64xf32, #tpu.memory_space<vmem>>, vector<1x64xf32>,
    } else {
    }
    %c0 = arith.constant 0 : index
    %c0_1 = arith.constant 0 : index
    %c0_2 = arith.constant 0 : index
    %3 = vector.load %arg2[%c0, %c0_1, %c0_2] : memref<1x64x64xf32, #tpu.memory_space<vmem>>, vector<1x64x64xf32>
    %4 = vector.shape_cast %3 : vector<1x64x64xf32> to vector<64x64xf32>
    %cst = arith.constant 1.000000e+00 : f32
    %5 = vector.broadcast %cst : f32 to vector<1x64xf32>
    %c0_3 = arith.constant 0 : index
    %c0_4 = arith.constant 0 : index
    %6 = vector.load %arg8[%c0_3, %c0_4] : memref<1x64xf32, #tpu.memory_space<vmem>>, vector<1x64xf32>
    %cst_5 = arith.constant dense<0.000000e+00> : vector<1x64xf32>
    %7 = tpu.matmul %5, %4, %cst_5 {dimension_numbers = #tpu.dot_dimension_numbers<[1], [1], [0], [0], [0, 0, 1, 0], [], []>} : vector<1x64xf32>, vector<64x64xf32>, vector<1x64xf32> -> vector<1x64xf32>
    %8 = arith.addf %6, %7 : vector<1x64xf32>
    %c0_6 = arith.constant 0 : index
    %c0_7 = arith.constant 0 : index
    %9 = vector.load %arg8[%c0_6, %c0_7] : memref<1x64xf32, #tpu.memory_space<vmem>>, vector<1x64xf32>
    tpu.vector_store %arg8[%c0_6, %c0_7], %8 {strides = array<i32>} : memref<1x64xf32, #tpu.memory_space<vmem>>, vector<1x64xf32>,
    %c0_8 = arith.constant 0 : index
    %c0_9 = arith.constant 0 : index
    %10 = vector.load %arg9[%c0_8, %c0_9] : memref<1x64xf32, #tpu.memory_space<vmem>>, vector<1x64xf32>
    %11 = arith.mulf %4, %4 : vector<64x64xf32>
    %cst_10 = arith.constant dense<0.000000e+00> : vector<1x64xf32>
    %12 = tpu.matmul %5, %11, %cst_10 {dimension_numbers = #tpu.dot_dimension_numbers<[1], [1], [0], [0], [0, 0, 1, 0], [], []>} : vector<1x64xf32>, vector<64x64xf32>, vector<1x64xf32> -> vector<1x64xf32>
    %13 = arith.addf %10, %12 : vector<1x64xf32>
    %c0_11 = arith.constant 0 : index
    %c0_12 = arith.constant 0 : index
    %14 = vector.load %arg9[%c0_11, %c0_12] : memref<1x64xf32, #tpu.memory_space<vmem>>, vector<1x64xf32>
    tpu.vector_store %arg9[%c0_11, %c0_12], %13 {strides = array<i32>} : memref<1x64xf32, #tpu.memory_space<vmem>>, vector<1x64xf32>,
    %c0_i32_13 = arith.constant 0 : i32
    %15 = arith.cmpi eq, %arg1, %c0_i32_13 : i32
    %16 = arith.extui %15 : i1 to i32
    %c0_i32_14 = arith.constant 0 : i32
    %17 = arith.cmpi ne, %16, %c0_i32_14 : i32
    scf.if %17 {
      %c0_15 = arith.constant 0 : index
      %c0_16 = arith.constant 0 : index
      %18 = vector.load %arg5[%c0_15, %c0_16] : memref<64x32xf32, #tpu.memory_space<vmem>>, vector<64x32xf32>
      %c0_17 = arith.constant 0 : index
      %c0_18 = arith.constant 0 : index
      %19 = vector.load %arg8[%c0_17, %c0_18] : memref<1x64xf32, #tpu.memory_space<vmem>>, vector<1x64xf32>
      %cst_19 = arith.constant dense<0.000000e+00> : vector<1x32xf32>
      %20 = tpu.matmul %19, %18, %cst_19 {dimension_numbers = #tpu.dot_dimension_numbers<[1], [0], [0], [1], [0, 0, 1, 1], [], []>} : vector<1x64xf32>, vector<64x32xf32>, vector<1x32xf32> -> vector<1x32xf32>
      %c0_20 = arith.constant 0 : index
      %c0_21 = arith.constant 0 : index
      %21 = vector.load %arg9[%c0_20, %c0_21] : memref<1x64xf32, #tpu.memory_space<vmem>>, vector<1x64xf32>
      %cst_22 = arith.constant dense<0.000000e+00> : vector<1x32xf32>
      %22 = tpu.matmul %21, %18, %cst_22 {dimension_numbers = #tpu.dot_dimension_numbers<[1], [0], [0], [1], [0, 0, 1, 1], [], []>} : vector<1x64xf32>, vector<64x32xf32>, vector<1x32xf32> -> vector<1x32xf32>
      %cst_23 = arith.constant 1.280000e+02 : f32
      %23 = vector.broadcast %cst_23 : f32 to vector<1x32xf32>
      %24 = arith.divf %20, %23 : vector<1x32xf32>
      %cst_24 = arith.constant 1.280000e+02 : f32
      %25 = vector.broadcast %cst_24 : f32 to vector<1x32xf32>
      %26 = arith.divf %22, %25 : vector<1x32xf32>
      %27 = arith.mulf %24, %24 : vector<1x32xf32>
      %28 = arith.subf %26, %27 : vector<1x32xf32>
      %cst_25 = arith.constant 0.000000e+00 : f32
      %29 = vector.broadcast %cst_25 : f32 to vector<1x32xf32>
      %30 = arith.maximumf %28, %29 : vector<1x32xf32>
      %cst_26 = arith.constant 9.99999997E-7 : f32
      %31 = vector.broadcast %cst_26 : f32 to vector<1x32xf32>
      %32 = arith.addf %30, %31 : vector<1x32xf32>
      %33 = math.rsqrt %32 : vector<1x32xf32>
      %cst_27 = arith.constant dense<0.000000e+00> : vector<1x64xf32>
      %34 = tpu.matmul %24, %18, %cst_27 {dimension_numbers = #tpu.dot_dimension_numbers<[1], [1], [0], [0], [0, 0, 1, 0], [], []>} : vector<1x32xf32>, vector<64x32xf32>, vector<1x64xf32> -> vector<1x64xf32>
      %cst_28 = arith.constant dense<0.000000e+00> : vector<1x64xf32>
      %35 = tpu.matmul %33, %18, %cst_28 {dimension_numbers = #tpu.dot_dimension_numbers<[1], [1], [0], [0], [0, 0, 1, 0], [], []>} : vector<1x32xf32>, vector<64x32xf32>, vector<1x64xf32> -> vector<1x64xf32>
      %c0_29 = arith.constant 0 : index
      %c0_30 = arith.constant 0 : index
      %36 = vector.load %arg3[%c0_29, %c0_30] : memref<1x64xf32, #tpu.memory_space<vmem>>, vector<1x64xf32>
      %37 = arith.mulf %36, %35 : vector<1x64xf32>
      %c0_31 = arith.constant 0 : index
      %c0_32 = arith.constant 0 : index
      %38 = vector.load %arg4[%c0_31, %c0_32] : memref<1x64xf32, #tpu.memory_space<vmem>>, vector<1x64xf32>
      %39 = arith.mulf %34, %37 : vector<1x64xf32>
      %40 = arith.subf %38, %39 : vector<1x64xf32>
      %c0_33 = arith.constant 0 : index
      %c0_34 = arith.constant 0 : index
      %c0_35 = arith.constant 0 : index
      %41 = vector.load %arg6[%c0_33, %c0_34, %c0_35] : memref<1x1x64xf32, #tpu.memory_space<vmem>>, vector<1x1x64xf32>
      %42 = vector.shape_cast %41 : vector<1x1x64xf32> to vector<1x64xf32>
      %43 = vector.shape_cast %37 : vector<1x64xf32> to vector<1x1x64xf32>
      tpu.vector_store %arg6[%c0_33, %c0_34, %c0_35], %43 {strides = array<i32>} : memref<1x1x64xf32, #tpu.memory_space<vmem>>, vector<1x1x64xf32>,
      %c0_36 = arith.constant 0 : index
      %c0_37 = arith.constant 0 : index
      %c0_38 = arith.constant 0 : index
      %44 = vector.load %arg7[%c0_36, %c0_37, %c0_38] : memref<1x1x64xf32, #tpu.memory_space<vmem>>, vector<1x1x64xf32>
      %45 = vector.shape_cast %44 : vector<1x1x64xf32> to vector<1x64xf32>
      %46 = vector.shape_cast %40 : vector<1x64xf32> to vector<1x1x64xf32>
      tpu.vector_store %arg7[%c0_36, %c0_37, %c0_38], %46 {strides = array<i32>} : memref<1x1x64xf32, #tpu.memory_space<vmem>>, vector<1x1x64xf32>,
    } else {
    }
    return
  }
  func.func @transform_0(%arg0: i32, %arg1: i32) -> (i32, i32, i32) {
    %c0_i32 = arith.constant 0 : i32
    %c0_i32_0 = arith.constant 0 : i32
    return %arg0, %c0_i32, %arg1 : i32, i32, i32
  }
  func.func @transform_1(%arg0: i32, %arg1: i32) -> (i32, i32) {
    %c0_i32 = arith.constant 0 : i32
    %c0_i32_0 = arith.constant 0 : i32
    %c0_i32_1 = arith.constant 0 : i32
    return %c0_i32, %c0_i32_0 : i32, i32
  }
  func.func @transform_2(%arg0: i32, %arg1: i32) -> (i32, i32) {
    %c0_i32 = arith.constant 0 : i32
    %c0_i32_0 = arith.constant 0 : i32
    %c0_i32_1 = arith.constant 0 : i32
    return %c0_i32, %c0_i32_0 : i32, i32
  }
  func.func @transform_3(%arg0: i32, %arg1: i32) -> (i32, i32) {
    %c0_i32 = arith.constant 0 : i32
    %c0_i32_0 = arith.constant 0 : i32
    %c0_i32_1 = arith.constant 0 : i32
    return %c0_i32, %c0_i32_0 : i32, i32
  }
  func.func @transform_4(%arg0: i32, %arg1: i32) -> (i32, i32, i32) {
    %c0_i32 = arith.constant 0 : i32
    %c0_i32_0 = arith.constant 0 : i32
    %c0_i32_1 = arith.constant 0 : i32
    return %arg0, %c0_i32, %c0_i32_0 : i32, i32, i32
  }
  func.func @transform_5(%arg0: i32, %arg1: i32) -> (i32, i32, i32) {
    %c0_i32 = arith.constant 0 : i32
    %c0_i32_0 = arith.constant 0 : i32
    %c0_i32_1 = arith.constant 0 : i32
    return %arg0, %c0_i32, %c0_i32_0 : i32, i32, i32
  }
}

</mosaic_0001>

<bundles_post_ra>
// kernel: tpu_custom_call.1
= control target key start
LH: loop header
LB: loop body
LE: loop exit
PB: predicated region body
PF: predicated region fallthrough
CT: control target
= control target key end

     0   :  { %11 = vsyncpa [#allocation5], 0  ;;  %s1885_s0 = inlined_call_operand.hbm [shape: f32[2,64,64], index: 0, kind: input, shape index: {}]   ;;  %s1886_s1 = inlined_call_operand.vmem [shape: f32[1,64], index: 1, kind: input, shape index: {}]   ;;  %s1887_s2 = inlined_call_operand.vmem [shape: f32[1,64], index: 2, kind: input, shape index: {}]   ;;  %s1888_s3 = inlined_call_operand.vmem [shape: f32[64,32], index: 3, kind: input, shape index: {}]   ;;  %s1889_s4 = inlined_call_operand.hbm [shape: f32[2,1,64], index: 4, kind: output, shape index: {0}]   ;;  %s1890_s5 = inlined_call_operand.hbm [shape: f32[2,1,64], index: 5, kind: output, shape index: {1}]  }
   0x1   :  { %13 = vsyncpa [#allocation5 + $0x1], 0 }
   0x2   :  { %14 = vsyncpa [#allocation6], 0 }
   0x3   :  { %16 = vsyncpa [#allocation6 + $0x1], 0 }
   0x4   :  { %17 = vsyncpa [#allocation9], 0 }
   0x5   :  { %19 = vsyncpa [#allocation9 + $0x1], 0  ;;  %s1536_s18 = smov 0   ;;  %s1538_s19 = smov 0  }
   0x6   :  { %s1540_s20 = smov 0   ;;  %s1542_s21 = smov 0  }
   0x7   :  { %s1544_s22 = smov 0   ;;  %s1546_s23 = smov 0  }
   0x8 LB: > { %s968_s24 = sadd.s32 4294967295, %s1495_s23   ;;  %s969_s25 = sadd.s32 4294967294, %s1495_s23   ;;  %s1495_s23 = sphi %s1546_s23, %s25_s23   ;;  %s1491_s22 = sphi %s1544_s22, %s1909_s22   ;;  %s1487_s21 = sphi %s1542_s21, %s1908_s21   ;;  %s1483_s20 = sphi %s1540_s20, %s1907_s20   ;;  %s1479_s19 = sphi %s1538_s19, %s1906_s19   ;;  %s1475_s18 = sphi %s1536_s18, %s1905_s18  }
   0x9   : > { %s37_s26 = sadd.s32 1, %s1491_s22  ;;  %s46_s27 = sadd.s32 1, %s1483_s20 }
   0xa   : > { %p39_p0 = scmp.ge.s32.totalorder %s37_s26, 2  ;;  %p53_p1 = scmp.ne.s32.totalorder %s1483_s20, %s1479_s19 }
   0xb   : > { %p54_p2 = scmp.eq.s32.totalorder %s1495_s23, 0  ;;  %p59_p3 = scmp.ne.s32.totalorder %s1479_s19, %s1475_s18 }
   0xc   : > { %s1911_s26 = smov (%p39_p0, %s37_s26), 0  ;;  %p60_p5 = scmp.eq.s32.totalorder %s968_s24, 0 }
   0xd   : > { %p1577_p4 = por %p54_p2, %p53_p1  ;;  %s41_s29 = ssub.s32 %s1491_s22, %s1911_s26 }
   0xe   : > { %p146_p6 = scmp.eq.s32.totalorder %s968_s24, 1  ;;  %p44_p7 = scmp.eq.s32.totalorder %s41_s29, 0 }
   0xf   : > { %p1583_p8 = por %p60_p5, %p59_p3  ;;  %p152_p10 = scmp.eq.s32.totalorder %s969_s25, 1 }
  0x10   : > { %p1587_p9 = por %p146_p6, %p53_p1  ;;  %p1293_p13 = scmp.lt.s32.totalorder %s1495_s23, 2 }
  0x11   : > { %s1592_s7 = scalar_select %p44_p7, %s1483_s20, %s46_s27  }
  0x12   : > { %s1894_s6 = scalar_select %p1587_p9, 1, 0 }
  0x13   : > { %p1594_p11 = por %p152_p10, %p59_p3  ;;  %s207_s9 = sand.u32 1, %s1483_s20  }
  0x14   : > { %s972_s10 = sshll.u32 %s207_s9, 6  ;;  %s1019_s11 = sshll.u32 %s1491_s22, 10 }
  0x15   : > { %s1895_s8 = scalar_select %p1594_p11, 1, 0 }
  0x16   : > { %s1605_s14 = scalar_lea.hbm %s1885_s0, %s1019_s11  ;;  %s211_s15 = scalar_lea.vmem [#allocation4], %s972_s10 }
  0x17   : > { %s219_s16 = sshll.u32 %s211_s15, 4  ;;  %p1611_p0 = pnand %p1293_p13, %p1577_p4  ;;  %s1607_s16 = int_to_ptr.vmem [resolvable:$true] %s219_s16 }
  0x18   : > { %s1616_s24 = scalar_lea.sflag [#allocation5], %s207_s9  ;;  %s1351_s25 = scalar_lea.hbm %s1605_s14, 1024 }
  0x19   : > { %p1352_p2 = scmp.ne.s32.totalorder %s1605_s14, %s1351_s25  ;;  %p1353_p3 = pneg %p1611_p0 }
  0x1a   : > { %s1356_s28 = scalar_lea.hbm %s1885_s0, 2048  ;;  %p1357_p4 = scmp.lt.u32.totalorder %s1605_s14, %s1885_s0 }
  0x1b   : > { %p1354_p5 = pnand %p1353_p3, %p1352_p2  ;;  %p1358_p7 = scmp.lt.u32.totalorder %s1356_s28, %s1351_s25 }
  0x1c   : > { %p1360_p13 = scmp.lt.u32.totalorder %s1351_s25, %s1605_s14 }
  0x1d   : > { %p1355_p6 = pneg %p1354_p5  ;;  %p1359_p10 = por %p1358_p7, %p1357_p4 }
  0x1f   : > { %p1361_p12 = por %p1360_p13, %p1359_p10 }
  0x21   : > { %p1362_p1 = pnand %p1361_p12, %p1355_p6 }
  0x23   : > { %1365 = shalt.err (!%p1362_p1)
}
  0x24   : > { %s1366_s9 = scalar_lea.vmem %s1607_s16, 1024  ;;  %s1497_s12 = smov [#allocation4]  }
  0x25   : > { %p1367_p2 = scmp.ne.s32.totalorder %s1607_s16, %s1366_s9  ;;  %s1371_s13 = sshll.u32 %s1497_s12, 4  ;;  %s1372_s13 = int_to_ptr.vmem [resolvable:$false] %s1371_s13 }
  0x26   : > { %s1373_s15 = scalar_lea.vmem %s1372_s13, 2048  ;;  %p1374_p9 = scmp.lt.s32.totalorder %s1607_s16, %s1372_s13 }
  0x27   : > { %p1369_p5 = pnand %p1367_p2, %p1353_p3  ;;  %p1375_p4 = scmp.lt.s32.totalorder %s1373_s15, %s1366_s9 }
  0x29   : > { %p1370_p11 = pneg %p1369_p5  ;;  %p1376_p7 = por %p1375_p4, %p1374_p9 }
  0x2b   : > { %p1377_p10 = pnand %p1376_p7, %p1370_p11 }
  0x2d   : > { %1380 = shalt.err (!%p1377_p10)
}
  0x2e   : > { %s1498_s25 = smov 128   ;;  %s1499_s27 = smov 8  }
  0x2f   : > { %1285 = dma.hbm_to_vmem [thread:$0]  (!%p1611_p0), %s1605_s14, 1024, %s1607_s16, %s1616_s24, %s1498_s25, %s1498_s25, %s1499_s27  }
  0x30   : > { %p227_p12 = scmp.lt.s32.totalorder %s1495_s23, 3  ;;  %p1897_p1 = scmp.ge.s32.totalorder %s1495_s23, 1 }
  0x32   : > { %p228_p3 = pnand %p1897_p1, %p227_p12 }
  0x33   : > { %s1648_s29 = sand.u32 (!%p228_p3), 1, %s1479_s19  }
  0x34   : > { %231 = sbr.rel (%p228_p3) target bundleno = 801 (0x321), region = 36  ;;  %s976_s28 = sshll.u32 (!%p228_p3), %s1648_s29, 6 }
  0x35   : > { %s234_s10 = scalar_lea.sflag (!%p228_p3), [#allocation5], %s1648_s29  ;;  %s1652_s11 = scalar_lea.vmem (!%p228_p3), [#allocation4], %s976_s28 }
  0x3b   : > { %1462 = dma.done.wait (%p1583_p8), %s234_s10, 1024  }
  0x3c   : > { %1464 = vsyncadd (%p1583_p8), %s234_s10, 4294966272  ;;  %v1500_v0 = vmov 0.0|0.0   ;;  %vm271_vm0 = vcmask 516096   ;;  %vm1501_vm1 = vmmov 0   ;;  %v1502_v1 = vmov 0.0   ;;  %v274_v2 = vld [vmem:[%s1652_s11] sm:$0xff] }
  0x3d   : > { %1188 = vmatprep.subr.bf16.mxu0 %v1500_v0  ;;  %1204 = vmatprep.subr.bf16.mxu1 %v1500_v0  ;;  %272 = vst.msk [vmem:[#allocation2] sm:$0x1] %vm271_vm0, %v1502_v1  ;;  %273 = vst.msk [vmem:[#allocation3] sm:$0x1] %vm271_vm0, %v1502_v1  ;;  %vm283_vm2 = vcmask 523264   ;;  %v275_v3 = vld [vmem:[%s1652_s11 + $0x8] sm:$0xff]  ;;  %v385_v6 = vmul.f32 %v274_v2, %v274_v2 }
  0x3e   : > { %1090 = vmatprep.mubr.msk.f32.mxu0 %vm1501_vm1, %v1502_v1  ;;  %1109 = vmatprep.mubr.msk.f32.mxu1 %vm1501_vm1, %v1502_v1  ;;  %vm1672_vm3 = vmpackc.low %vm283_vm2, %vm283_vm2  ;;  %v1189_v5 = vpack.c.bf16 %v275_v3, %v274_v2  ;;  %v386_v7 = vmul.f32 %v275_v3, %v275_v3  ;;  %v276_v8 = vld [vmem:[%s1652_s11 + $0x10] sm:$0xff]  ;;  %v277_v9 = vld [vmem:[%s1652_s11 + $0x18] sm:$0xff]  ;;  %v1503_v30 = vmov 1.0   ;;  %vm656_vm4 = vcmask 261120   ;;  %s1015_s24 = sshll.u32 %s1487_s21, 4  ;;  %s260_s9 = scalar_lea.vmem [#allocation7], %s1648_s29 }
  0x3f   : > { %v387_v11 = vmul.f32 %v276_v8, %v276_v8  ;;  %v388_v12 = vmul.f32 %v277_v9, %v277_v9  ;;  %v1193_v13 = vpack.c.bf16 %v277_v9, %v276_v8  ;;  %v278_v15 = vld [vmem:[%s1652_s11 + $0x20] sm:$0xff]  ;;  %v279_v16 = vld [vmem:[%s1652_s11 + $0x28] sm:$0xff]  ;;  %v280_v21 = vld [vmem:[%s1652_s11 + $0x30] sm:$0xff]  ;;  %s851_s12 = sshll.u32 %s260_s9, 4  ;;  %s1792_s25 = scalar_lea.hbm %s1889_s4, %s1015_s24  ;;  %s1794_s12 = int_to_ptr.vmem [resolvable:$true] %s851_s12 }
  0x40   : > { %1191 = vmatpush3.bf16.xpose.msk.msra.mxu0 %vm1672_vm3, %v1189_v5  ;;  %v1205_v10 = vpack.c.bf16 %v386_v7, %v385_v6  ;;  %v389_v17 = vmul.f32 %v278_v15, %v278_v15  ;;  %v390_v18 = vmul.f32 %v279_v16, %v279_v16  ;;  %v1197_v19 = vpack.c.bf16 %v279_v16, %v278_v15  ;;  %v281_v22 = vld [vmem:[%s1652_s11 + $0x38] sm:$0xff]  ;;  %v493_v28 = vld [vmem:[%s1888_s3 + $0x8] sm:$0xff]  ;;  %v494_v31 = vld [vmem:[%s1888_s3 + $0x10] sm:$0xff]  ;;  %s266_s10 = scalar_lea.vmem [#allocation8], %s1648_s29  ;;  %s835_s30 = scalar_lea.sflag [#allocation6], %s1648_s29 }
  0x41   : > { %1192 = vmatprep.subr.bf16.mxu0 %v1500_v0  ;;  %v1209_v14 = vpack.c.bf16 %v388_v12, %v387_v11  ;;  %v391_v23 = vmul.f32 %v280_v21, %v280_v21  ;;  %v392_v24 = vmul.f32 %v281_v22, %v281_v22  ;;  %v1201_v25 = vpack.c.bf16 %v281_v22, %v280_v21  ;;  %v492_v27 = vld [vmem:[%s1888_s3] sm:$0xff]  ;;  %v495_v32 = vld [vmem:[%s1888_s3 + $0x18] sm:$0xff]  ;;  %v497_v35 = vld [vmem:[%s1888_s3 + $0x28] sm:$0xff]  ;;  %s1802_s11 = sshll.u32 %s266_s10, 4  ;;  %s1381_s14 = scalar_lea.vmem %s1794_s12, 16  ;;  %s1835_s11 = int_to_ptr.vmem [resolvable:$true] %s1802_s11 }
  0x42   : > { %1207 = vmatpush3.bf16.xpose.msk.msra.mxu1 %vm1672_vm3, %v1205_v10  ;;  %v1213_v20 = vpack.c.bf16 %v390_v18, %v389_v17  ;;  %v1221_v29 = vpack.c.bf16 %v493_v28, %v492_v27  ;;  %v1224_v33 = vpack.c.bf16 %v495_v32, %v494_v31  ;;  %v496_v34 = vld [vmem:[%s1888_s3 + $0x20] sm:$0xff]  ;;  %v498_v37 = vld [vmem:[%s1888_s3 + $0x30] sm:$0xff]  ;;  %v499_v38 = vld [vmem:[%s1888_s3 + $0x38] sm:$0xff]  ;;  %p1382_p8 = scmp.ne.s32.totalorder %s1794_s12, %s1381_s14  ;;  %p1902_p9 = scmp.ne.s32.totalorder %s1894_s6, 0 }
  0x43   : > { %1208 = vmatprep.subr.bf16.mxu1 %v1500_v0  ;;  %v1217_v26 = vpack.c.bf16 %v392_v24, %v391_v23  ;;  %v1227_v36 = vpack.c.bf16 %v497_v35, %v496_v34  ;;  %v1230_v39 = vpack.c.bf16 %v499_v38, %v498_v37  ;;  %vm1748_vm5 = vmpackc.low %vm656_vm4, %vm656_vm4  ;;  %v829_v4 = vld [vmem:[%s1887_s2] sm:$0x1]  ;;  %s1504_s16 = smov [#allocation7]  }
  0x44   : > { %v282_v40 = vld [vmem:[#allocation2] sm:$0x1]  ;;  %v384_v42 = vld [vmem:[#allocation3] sm:$0x1]  ;;  %p1383_p11 = pnand %p1382_p8, %p1902_p9  ;;  %s1385_s17 = sshll.u32 %s1504_s16, 4  ;;  %s1386_s17 = int_to_ptr.vmem [resolvable:$false] %s1385_s17 }
  0x45   : > { %s1387_s13 = scalar_lea.vmem %s1386_s17, 32  ;;  %p1388_p6 = scmp.lt.s32.totalorder %s1794_s12, %s1386_s17 }
  0x46   : > { %p1384_p0 = pneg %p1383_p11  ;;  %p1389_p13 = scmp.lt.s32.totalorder %s1387_s13, %s1381_s14 }
  0x48   : > { %1195 = vmatpush3.bf16.xpose.msk.msra.mxu0 %vm1672_vm3, %v1193_v13  ;;  %p1390_p2 = por %p1389_p13, %p1388_p6 }
  0x49   : > { %1196 = vmatprep.subr.bf16.mxu0 %v1500_v0 }
  0x4a   : > { %1211 = vmatpush3.bf16.xpose.msk.msra.mxu1 %vm1672_vm3, %v1209_v14  ;;  %p1391_p5 = pnand %p1390_p2, %p1384_p0 }
  0x4b   : > { %1212 = vmatprep.subr.bf16.mxu1 %v1500_v0 }
  0x50   : > { %1199 = vmatpush3.bf16.xpose.msk.msra.mxu0 %vm1672_vm3, %v1197_v19 }
  0x51   : > { %1200 = vmatprep.subr.bf16.mxu0 %v1500_v0 }
  0x52   : > { %1215 = vmatpush3.bf16.xpose.msk.msra.mxu1 %vm1672_vm3, %v1213_v20 }
  0x53   : > { %1216 = vmatprep.subr.bf16.mxu1 %v1500_v0 }
  0x58   : > { %1203 = vmatpush3.bf16.xpose.msk.msra.mxu0 %vm1672_vm3, %v1201_v25 }
  0x59   : > { %1220 = vmatprep.subr.bf16.mxu0 %v1500_v0 }
  0x5a   : > { %1219 = vmatpush3.bf16.xpose.msk.msra.mxu1 %vm1672_vm3, %v1217_v26 }
  0x5b   : > { %1232 = vmatprep.subr.bf16.mxu1 %v1500_v0 }
  0x5f   : > { %1091 = vmatmul.mubr.msk.f32.vlgmr.msra.gmra.mrb[0].mxu0 %vm283_vm2, %v1503_v30 }
  0x60   : > { %1222 = vmatpush3.bf16.msra.mxu0 %v1221_v29  ;;  %1128 = vmatprep.mubr.msk.f32.mxu0 %vm1501_vm1, %v1502_v1 }
  0x61   : > { %1110 = vmatmul.mubr.msk.f32.vlgmr.msra.gmra.mrb[0].mxu1 %vm283_vm2, %v1503_v30  ;;  %1223 = vmatprep.subr.bf16.mxu0 %v1500_v0 }
  0x62   : > { %1234 = vmatpush3.bf16.msra.mxu1 %v1221_v29  ;;  %1147 = vmatprep.mubr.msk.f32.mxu1 %vm1501_vm1, %v1502_v1 }
  0x63   : > { %1235 = vmatprep.subr.bf16.mxu1 %v1500_v0 }
  0x64   : > { %1225 = vmatpush3.bf16.msra.mxu0 %v1224_v33 }
  0x65   : > { %1226 = vmatprep.subr.bf16.mxu0 %v1500_v0 }
  0x66   : > { %1237 = vmatpush3.bf16.msra.mxu1 %v1224_v33 }
  0x67   : > { %1238 = vmatprep.subr.bf16.mxu1 %v1500_v0 }
  0x68   : > { %1228 = vmatpush3.bf16.msra.mxu0 %v1227_v36 }
  0x69   : > { %1229 = vmatprep.subr.bf16.mxu0 %v1500_v0 }
  0x6a   : > { %1240 = vmatpush3.bf16.msra.mxu1 %v1227_v36 }
  0x6b   : > { %1241 = vmatprep.subr.bf16.mxu1 %v1500_v0 }
  0x6c   : > { %1231 = vmatpush3.bf16.msra.mxu0 %v1230_v39 }
  0x6d   : > { %1244 = vmatprep.subr.bf16.mxu0 %v1500_v0 }
  0x6e   : > { %1243 = vmatpush3.bf16.msra.mxu1 %v1230_v39 }
  0x6f   : > { %1260 = vmatprep.subr.bf16.mxu1 %v1500_v0 }
 0x132   : > { %v377_v41 = vpop.f32.mrb[0].mxu0 }
 0x133   : > { %v381_v43 = vadd.f32 %v377_v41, %v282_v40  ;;  %v1092_v44 = vpop.f32.mrb[1].mxu0 }
 0x134   : > { %v483_v45 = vpop.f32.mrb[0].mxu1 }
 0x135   : > { %383 = vst.msk [vmem:[#allocation2] sm:$0x1] %vm271_vm0, %v381_v43  ;;  %v487_v46 = vadd.f32 %v483_v45, %v384_v42  ;;  %v1111_v47 = vpop.f32.mrb[1].mxu1 }
 0x137   : > { %488 = vst.msk [vmem:[#allocation3] sm:$0x1] %vm271_vm0, %v487_v46 }
 0x13c   : > { %v500_v49 = vld [vmem:[#allocation2] sm:$0x1] }
 0x13d   : > { %1129 = vmatmul.mubr.msk.f32.vlgmr.msra.gmra.mrb[2].mxu0 %vm283_vm2, %v500_v49 }
 0x13e   : > { %v574_v50 = vld [vmem:[#allocation3] sm:$0x1]  ;;  %1247 = vmatpush3.bf16.xpose.msk.msra.mxu0 %vm1748_vm5, %v1221_v29  ;;  %1166 = vmatprep.mubr.msk.f32.mxu0 %vm1501_vm1, %v1502_v1 }
 0x13f   : > { %1148 = vmatmul.mubr.msk.f32.vlgmr.msra.gmra.mrb[2].mxu1 %vm283_vm2, %v574_v50  ;;  %1248 = vmatprep.subr.bf16.mxu0 %v1500_v0 }
 0x140   : > { %1263 = vmatpush3.bf16.xpose.msk.msra.mxu1 %vm1748_vm5, %v1221_v29  ;;  %1185 = vmatprep.mubr.msk.f32.mxu1 %vm1501_vm1, %v1502_v1 }
 0x141   : > { %1264 = vmatprep.subr.bf16.mxu1 %v1500_v0 }
 0x146   : > { %1251 = vmatpush3.bf16.xpose.msk.msra.mxu0 %vm1748_vm5, %v1224_v33 }
 0x147   : > { %1252 = vmatprep.subr.bf16.mxu0 %v1500_v0 }
 0x148   : > { %1267 = vmatpush3.bf16.xpose.msk.msra.mxu1 %vm1748_vm5, %v1224_v33 }
 0x149   : > { %1268 = vmatprep.subr.bf16.mxu1 %v1500_v0 }
 0x14e   : > { %1255 = vmatpush3.bf16.xpose.msk.msra.mxu0 %vm1748_vm5, %v1227_v36 }
 0x14f   : > { %1256 = vmatprep.subr.bf16.mxu0 %v1500_v0 }
 0x150   : > { %1271 = vmatpush3.bf16.xpose.msk.msra.mxu1 %vm1748_vm5, %v1227_v36 }
 0x151   : > { %1272 = vmatprep.subr.bf16.mxu1 %v1500_v0  ;;  %v827_v0 = vld [vmem:[%s1886_s1] sm:$0x1] }
 0x156   : > { %1259 = vmatpush3.bf16.xpose.msk.msra.mxu0 %vm1748_vm5, %v1230_v39 }
 0x158   : > { %1275 = vmatpush3.bf16.xpose.msk.msra.mxu1 %vm1748_vm5, %v1230_v39 }
 0x210   : > { %v570_v51 = vpop.f32.mrb[2].mxu0 }
 0x211   : > { %v649_v52 = vmul.f32 0.0078125, %v570_v51  ;;  %v1130_v53 = vpop.f32.mrb[3].mxu0 }
 0x212   : > { %v644_v54 = vpop.f32.mrb[2].mxu1 }
 0x213   : > { %v651_v55 = vmul.f32 %v649_v52, %v649_v52  ;;  %v650_v56 = vmul.f32 0.0078125, %v644_v54  ;;  %v1149_v57 = vpop.f32.mrb[3].mxu1  ;;  %1167 = vmatmul.mubr.msk.f32.vlgmr.msra.gmra.mrb[4].mxu0 %vm656_vm4, %v649_v52 }
 0x215   : > { %v652_v58 = vsub.f32 %v650_v56, %v651_v55 }
 0x217   : > { %v653_v59 = vmax.f32 %v652_v58, 0.0 }
 0x219   : > { %v654_v60 = vadd.f32 1e-06, %v653_v59 }
 0x21b   : > { %1349 = vrsqrt.f32 %v654_v60 }
 0x225   : > { %v1350_v61 = vpop.eup %1349 }
 0x226   : > { %1186 = vmatmul.mubr.msk.f32.vlgmr.msra.gmra.mrb[4].mxu1 %vm656_vm4, %v1350_v61 }
 0x2e6   : > { %v750_v62 = vpop.f32.mrb[4].mxu0 }
 0x2e7   : > { %v1168_v63 = vpop.f32.mrb[5].mxu0 }
 0x2f9   : > { %v823_v1 = vpop.f32.mrb[4].mxu1 }
 0x2fa   : > { %v828_v2 = vmul.f32 %v827_v0, %v823_v1  ;;  %v1187_v3 = vpop.f32.mrb[5].mxu1 }
 0x2fc   : > { %v830_v5 = vmul.f32 %v828_v2, %v750_v62  ;;  %832 = vst.msk [vmem:[%s260_s9] sm:$0x1] %vm271_vm0, %v828_v2 }
 0x2fd   : > { %1394 = shalt.err (!%p1391_p5)
}
 0x2fe   : > { %s1395_s9 = scalar_lea.hbm %s1792_s25, 16  ;;  %s1399_s28 = scalar_lea.hbm %s1889_s4, 32 }
 0x2ff   : > { %p1396_p4 = scmp.ne.s32.totalorder %s1792_s25, %s1395_s9  ;;  %p1400_p12 = scmp.lt.u32.totalorder %s1792_s25, %s1889_s4 }
 0x300   : > { %p1401_p1 = scmp.lt.u32.totalorder %s1399_s28, %s1395_s9  ;;  %p1403_p8 = scmp.lt.u32.totalorder %s1395_s9, %s1792_s25 }
 0x301   : > { %p1397_p7 = pnand %p1396_p4, %p1902_p9 }
 0x302   : > { %p1402_p3 = por %p1401_p1, %p1400_p12 }
 0x303   : > { %p1398_p10 = pneg %p1397_p7 }
 0x304   : > { %p1404_p11 = por %p1403_p8, %p1402_p3 }
 0x306   : > { %p1405_p0 = pnand %p1404_p11, %p1398_p10 }
 0x308   : > { %1408 = shalt.err (!%p1405_p0)
}
 0x309   : > { %1278 = dma.vmem_to_hbm [thread:$0]  (%p1902_p9), %s1794_s12, 16, %s1792_s25, %s835_s30   ;;  %v831_v6 = vsub.f32 %v829_v4, %v830_v5 }
 0x30a   : > { %s1832_s15 = scalar_lea.hbm %s1890_s5, %s1015_s24  ;;  %s839_s9 = scalar_lea.sflag [#allocation9], %s1648_s29 }
 0x30b   : > { %833 = vst.msk [vmem:[%s266_s10] sm:$0x1] %vm271_vm0, %v831_v6  ;;  %s1409_s27 = scalar_lea.vmem %s1835_s11, 16  ;;  %s1505_s21 = smov [#allocation8]  }
 0x30c   : > { %p1410_p6 = scmp.ne.s32.totalorder %s1835_s11, %s1409_s27  ;;  %s1413_s12 = sshll.u32 %s1505_s21, 4  ;;  %s1414_s12 = int_to_ptr.vmem [resolvable:$false] %s1413_s12 }
 0x30d   : > { %s1415_s25 = scalar_lea.vmem %s1414_s12, 32  ;;  %p1416_p5 = scmp.lt.s32.totalorder %s1835_s11, %s1414_s12 }
 0x30e   : > { %p1411_p13 = pnand %p1410_p6, %p1902_p9  ;;  %p1417_p4 = scmp.lt.s32.totalorder %s1415_s25, %s1409_s27 }
 0x310   : > { %p1412_p2 = pneg %p1411_p13  ;;  %p1418_p7 = por %p1417_p4, %p1416_p5 }
 0x312   : > { %p1419_p10 = pnand %p1418_p7, %p1412_p2 }
 0x314   : > { %1422 = shalt.err (!%p1419_p10)
}
 0x315   : > { %s1423_s29 = scalar_lea.hbm %s1832_s15, 16  ;;  %s1427_s30 = scalar_lea.hbm %s1890_s5, 32 }
 0x316   : > { %p1424_p12 = scmp.ne.s32.totalorder %s1832_s15, %s1423_s29  ;;  %p1428_p8 = scmp.lt.u32.totalorder %s1832_s15, %s1890_s5 }
 0x317   : > { %p1429_p11 = scmp.lt.u32.totalorder %s1427_s30, %s1423_s29  ;;  %p1431_p6 = scmp.lt.u32.totalorder %s1423_s29, %s1832_s15 }
 0x318   : > { %p1425_p1 = pnand %p1424_p12, %p1902_p9 }
 0x319   : > { %p1430_p0 = por %p1429_p11, %p1428_p8 }
 0x31a   : > { %p1426_p3 = pneg %p1425_p1 }
 0x31b   : > { %p1432_p13 = por %p1431_p6, %p1430_p0 }
 0x31d   : > { %p1433_p2 = pnand %p1432_p13, %p1426_p3 }
 0x31f   : > { %1436 = shalt.err (!%p1433_p2)
}
 0x320   : > { %1279 = dma.vmem_to_hbm [thread:$0]  (%p1902_p9), %s1835_s11, 16, %s1832_s15, %s839_s9  }
 0x321 PF: > { %s876_s17 = sand.u32 1, %s1475_s18   ;;  %p1903_p5 = scmp.ne.s32.totalorder %s1895_s8, 0 }
 0x322   : > { %p1904_p4 = scmp.ge.s32.totalorder %s1495_s23, 2  ;;  %s877_s14 = scalar_lea.sflag [#allocation6], %s876_s17 }
 0x324   : > { %p1287_p7 = pnand %p1904_p4, %p1903_p5 }
 0x326   : > { %1466 = dma.done.wait (!%p1287_p7), %s877_s14, 16  }
 0x327   : > { %1468 = vsyncadd (!%p1287_p7), %s877_s14, 4294967280  ;;  %s885_s13 = scalar_lea.sflag [#allocation9], %s876_s17 }
 0x328   : > { %1470 = dma.done.wait (!%p1287_p7), %s885_s13, 16  }
 0x329   : > { %1472 = vsyncadd (!%p1287_p7), %s885_s13, 4294967280  ;;  %s25_s23 = sadd.s32 1, %s1495_s23   ;;  %s1905_s18 = smov %s1479_s19 }
 0x32a   : > { %p22_p10 = scmp.ge.s32.totalorder %s25_s23, 4   ;;  %s1906_s19 = smov %s1483_s20 }
 0x32b   : > { %s1907_s20 = smov %s1592_s7  ;;  %s1908_s21 = smov %s1491_s22 }
 0x32c   : > { %s1909_s22 = smov %s1911_s26  ;;  %24 = sbr.rel (!%p22_p10) target bundleno = 8 (0x8), region = 106 }
 0x333   :  { %889 = vsyncpa [#allocation5], 1 }
 0x334   :  { %891 = vsyncpa [#allocation5 + $0x1], 1 }
 0x335   :  { %892 = vsyncpa [#allocation6], 1 }
 0x336   :  { %894 = vsyncpa [#allocation6 + $0x1], 1 }
 0x337   :  { %895 = vsyncpa [#allocation9], 1 }
 0x338   :  { %897 = vsyncpa [#allocation9 + $0x1], 1 }

</bundles_post_ra>
